<compile_context>
chip_gen: v5e
topology: v5e:2x2
jax: 0.10.0
libtpu: 0.0.40
codegen_flags: <defaults>
</compile_context>

<pallas_src>
import jax
import jax.numpy as jnp
from jax.experimental import pallas as pl
from jax.experimental.pallas import tpu as pltpu


def _build_kernel(layer_params, T, TB, out_dims):
    """layer_params: list of (vdecay, vth) for every layer (hidden... + output)."""
    n_layers = len(layer_params)

    def kernel(x_ref, *rest):
        w_refs = rest[:n_layers]
        b_refs = rest[n_layers:2 * n_layers]
        out_ref = rest[2 * n_layers]

        # ---- Hoisted layer-0 GEMM: one MXU matmul over all T timesteps of this
        # batch tile (M = T*TB) instead of T tiny matmuls.  bf16 in, f32 acc.
        cur0_all = (
            jnp.dot(x_ref[...], w_refs[0][...],
                    preferred_element_type=jnp.float32)
            + b_refs[0][...]                      # (1, H0) broadcast, done once
        )                                         # (T*TB, H0) f32

        # Weights / bias broadcasts hoisted out of the time loop
        # (JAX does not CSE broadcast_in_dim inside traced loops).
        w_vals = [w_refs[li][...] for li in range(1, n_layers)]
        b_vals = [jnp.broadcast_to(b_refs[li][...], (TB, out_dims[li]))
                  for li in range(1, n_layers)]

        # Recurrent state lives entirely in vregs (no scratch).
        volts = [jnp.zeros((TB, d), jnp.float32) for d in out_dims]
        spikes = [jnp.zeros((TB, d), jnp.bool_) for d in out_dims]
        acc = jnp.zeros((TB, out_dims[-1]), jnp.float32)

        # T is small: static unrolled time loop with static, sublane-aligned
        # slices of the hoisted layer-0 currents.
        for t in range(T):
            x_bf = None
            for li, (vdecay, vth) in enumerate(layer_params):
                if li == 0:
                    cur = cur0_all[t * TB:(t + 1) * TB, :]
                else:
                    cur = (jnp.dot(x_bf, w_vals[li - 1],
                                   preferred_element_type=jnp.float32)
                           + b_vals[li - 1])
                # volt = vdecay*volt*(1-spike_prev) + cur   (spikes are binary)
                volt = jnp.where(spikes[li], cur, vdecay * volts[li] + cur)
                spk = volt > vth
                volts[li] = volt
                spikes[li] = spk
                x_bf = spk.astype(jnp.bfloat16)   # exact 0/1, MXU-native dtype
            acc = acc + spikes[-1].astype(jnp.float32)

        out_ref[...] = acc

    return kernel


def backprop_snn_forward(spike_data, weights, biases, layer_params):
    """
    Args:
      spike_data: (B, input_dim, T) float32 spikes (PyTorch layout).
      weights:    list of (in_dim, out_dim) float32 (nn.Linear weight transposed).
      biases:     list of (1, out_dim) float32.
      layer_params: list of (vdecay, vth) per layer (hidden layers then output).
    Returns:
      (B, output_dim) float32 spike counts.
    """
    B, input_dim, T = spike_data.shape
    out_dims = [w.shape[1] for w in weights]
    output_dim = out_dims[-1]

    # Batch tile: sublane-aligned; pads tiny batches, tiles large ones so the
    # "parallel" grid axis can be sharded across TensorCores (v7x megacore).
    TB = 8
    B_pad = ((B + TB - 1) // TB) * TB
    n_tiles = B_pad // TB

    # Layout glue: (B, Din, T) -> rows grouped per batch tile, time-major inside
    # the tile: row = tile*T*TB + t*TB + b_local.  Spikes are exact in bf16.
    x_tmaj = jnp.transpose(spike_data, (2, 0, 1)).astype(jnp.float32)  # (T, B, Din)
    x_tmaj = jnp.pad(x_tmaj, ((0, 0), (0, B_pad - B), (0, 0)))          # zero rows
    x2d = (x_tmaj.reshape(T, n_tiles, TB, input_dim)
                 .transpose(1, 0, 2, 3)
                 .reshape(n_tiles * T * TB, input_dim)
                 .astype(jnp.bfloat16))

    w_bf16 = [w.astype(jnp.bfloat16) for w in weights]
    b_f32 = [b.astype(jnp.float32) for b in biases]

    kernel = _build_kernel(layer_params, T=T, TB=TB, out_dims=out_dims)

    in_specs = [pl.BlockSpec((T * TB, input_dim), lambda i: (i, 0))]
    in_specs += [pl.BlockSpec(w.shape, lambda i: (0, 0)) for w in w_bf16]
    in_specs += [pl.BlockSpec(b.shape, lambda i: (0, 0)) for b in b_f32]

    out = pl.pallas_call(
        kernel,
        out_shape=jax.ShapeDtypeStruct((B_pad, output_dim), jnp.float32),
        grid_spec=pltpu.PrefetchScalarGridSpec(
            num_scalar_prefetch=0,
            grid=(n_tiles,),
            in_specs=in_specs,
            out_specs=pl.BlockSpec((TB, output_dim), lambda i: (i, 0)),
        ),
        compiler_params=pltpu.CompilerParams(
            dimension_semantics=("parallel",)),
    )(x2d, *w_bf16, *b_f32)

    return out[:B]


def _reference_forward(spike_data, weights, biases, layer_params):
    """Pure-JAX reference matching the PyTorch module's forward semantics
    (same bf16-weight / f32-accumulation precision as the kernel)."""
    B, input_dim, T = spike_data.shape
    w_bf = [w.astype(jnp.bfloat16) for w in weights]
    volts = [jnp.zeros((B, w.shape[1]), jnp.float32) for w in weights]
    spikes = [jnp.zeros((B, w.shape[1]), jnp.float32) for w in weights]
    out_acc = jnp.zeros((B, weights[-1].shape[1]), jnp.float32)
    for tt in range(T):
        x = spike_data[:, :, tt].astype(jnp.bfloat16)
        for li, (vdecay, vth) in enumerate(layer_params):
            cur = (jnp.dot(x, w_bf[li], preferred_element_type=jnp.float32)
                   + biases[li].astype(jnp.float32))
            volts[li] = vdecay * volts[li] * (1.0 - spikes[li]) + cur
            spikes[li] = (volts[li] > vth).astype(jnp.float32)
            x = spikes[li].astype(jnp.bfloat16)
        out_acc = out_acc + spikes[-1]
    return out_acc


if __name__ == "__main__":
    # Small shapes consistent with the module's forward:
    # spike_data: (batch_size, input_dim, spike_ts)
    batch_size = 2
    input_dim = 16
    hidden_dim_list = [32, 32]
    output_dim = 8
    spike_ts = 8

    # Neuron params (vdecay, vth) per layer: hidden layers then output layer.
    layer_params = [(0.5, 0.5), (0.5, 0.5), (0.5, 0.5)]

    key = jax.random.PRNGKey(0)
    dims = [input_dim] + hidden_dim_list + [output_dim]
    weights, biases = [], []
    for li in range(len(dims) - 1):
        key, kw, kb = jax.random.split(key, 3)
        fan_in = dims[li]
        bound = 1.0 / jnp.sqrt(fan_in)
        # (in_dim, out_dim) i.e. nn.Linear weight transposed
        weights.append(jax.random.uniform(kw, (dims[li], dims[li + 1]),
                                          jnp.float32, -bound, bound))
        biases.append(jax.random.uniform(kb, (1, dims[li + 1]),
                                         jnp.float32, -bound, bound))

    key, kx = jax.random.split(key)
    spike_data = (jax.random.uniform(kx, (batch_size, input_dim, spike_ts))
                  < 0.5).astype(jnp.float32)

    out = backprop_snn_forward(spike_data, weights, biases, layer_params)
    out = jax.block_until_ready(out)

    ref = _reference_forward(spike_data, weights, biases, layer_params)
    assert out.shape == (batch_size, output_dim)
    assert jnp.allclose(out, ref, atol=1e-4), (out, ref)

    print("KERNEL_OK")
</pallas_src>

<mosaic_0001>
module attributes {stable_mosaic.version = 11 : i64} {
  func.func @kernel(%arg0: i32, %arg1: memref<64x16xbf16, #tpu.memory_space<vmem>>, %arg2: memref<16x32xbf16, #tpu.memory_space<vmem>>, %arg3: memref<32x32xbf16, #tpu.memory_space<vmem>>, %arg4: memref<32x8xbf16, #tpu.memory_space<vmem>>, %arg5: memref<1x32xf32, #tpu.memory_space<vmem>>, %arg6: memref<1x32xf32, #tpu.memory_space<vmem>>, %arg7: memref<1x8xf32, #tpu.memory_space<vmem>>, %arg8: memref<8x8xf32, #tpu.memory_space<vmem>>) attributes {dimension_semantics = [#tpu.dimension_semantics<parallel>], iteration_bounds = array<i64: 1>, scalar_prefetch = 0 : i64, scratch_operands = 0 : i64, tpu.core_type = #tpu.core_type<tc>, window_params = [{transform_indices = @transform_0, window_bounds = array<i64: 64, 16>}, {pipeline_mode = #tpu.pipeline_mode<synchronous>, transform_indices = @transform_1, window_bounds = array<i64: 16, 32>}, {pipeline_mode = #tpu.pipeline_mode<synchronous>, transform_indices = @transform_2, window_bounds = array<i64: 32, 32>}, {pipeline_mode = #tpu.pipeline_mode<synchronous>, transform_indices = @transform_3, window_bounds = array<i64: 32, 8>}, {pipeline_mode = #tpu.pipeline_mode<synchronous>, transform_indices = @transform_4, window_bounds = array<i64: 1, 32>}, {pipeline_mode = #tpu.pipeline_mode<synchronous>, transform_indices = @transform_5, window_bounds = array<i64: 1, 32>}, {pipeline_mode = #tpu.pipeline_mode<synchronous>, transform_indices = @transform_6, window_bounds = array<i64: 1, 8>}, {transform_indices = @transform_7, window_bounds = array<i64: 8, 8>}]} {
    %c0 = arith.constant 0 : index
    %c0_0 = arith.constant 0 : index
    %0 = vector.load %arg1[%c0, %c0_0] : memref<64x16xbf16, #tpu.memory_space<vmem>>, vector<64x16xbf16>
    %c0_1 = arith.constant 0 : index
    %c0_2 = arith.constant 0 : index
    %1 = vector.load %arg2[%c0_1, %c0_2] : memref<16x32xbf16, #tpu.memory_space<vmem>>, vector<16x32xbf16>
    %cst = arith.constant dense<0.000000e+00> : vector<64x32xf32>
    %2 = tpu.matmul %0, %1, %cst {dimension_numbers = #tpu.dot_dimension_numbers<[1], [0], [0], [1], [0, 0, 1, 1], [], []>} : vector<64x16xbf16>, vector<16x32xbf16>, vector<64x32xf32> -> vector<64x32xf32>
    %c0_3 = arith.constant 0 : index
    %c0_4 = arith.constant 0 : index
    %3 = vector.load %arg5[%c0_3, %c0_4] : memref<1x32xf32, #tpu.memory_space<vmem>>, vector<1x32xf32>
    %4 = vector.broadcast %3 : vector<1x32xf32> to vector<64x32xf32>
    %5 = arith.addf %2, %4 : vector<64x32xf32>
    %c0_5 = arith.constant 0 : index
    %c0_6 = arith.constant 0 : index
    %6 = vector.load %arg3[%c0_5, %c0_6] : memref<32x32xbf16, #tpu.memory_space<vmem>>, vector<32x32xbf16>
    %c0_7 = arith.constant 0 : index
    %c0_8 = arith.constant 0 : index
    %7 = vector.load %arg4[%c0_7, %c0_8] : memref<32x8xbf16, #tpu.memory_space<vmem>>, vector<32x8xbf16>
    %c0_9 = arith.constant 0 : index
    %c0_10 = arith.constant 0 : index
    %8 = vector.load %arg6[%c0_9, %c0_10] : memref<1x32xf32, #tpu.memory_space<vmem>>, vector<1x32xf32>
    %9 = vector.shape_cast %8 : vector<1x32xf32> to vector<1x32xf32>
    %10 = vector.broadcast %9 : vector<1x32xf32> to vector<8x32xf32>
    %c0_11 = arith.constant 0 : index
    %c0_12 = arith.constant 0 : index
    %11 = vector.load %arg7[%c0_11, %c0_12] : memref<1x8xf32, #tpu.memory_space<vmem>>, vector<1x8xf32>
    %12 = vector.shape_cast %11 : vector<1x8xf32> to vector<1x8xf32>
    %13 = vector.broadcast %12 : vector<1x8xf32> to vector<8x8xf32>
    %cst_13 = arith.constant 0.000000e+00 : f32
    %14 = vector.broadcast %cst_13 : f32 to vector<8x32xf32>
    %cst_14 = arith.constant 0.000000e+00 : f32
    %15 = vector.broadcast %cst_14 : f32 to vector<8x32xf32>
    %cst_15 = arith.constant 0.000000e+00 : f32
    %16 = vector.broadcast %cst_15 : f32 to vector<8x8xf32>
    %false = arith.constant false
    %17 = vector.broadcast %false : i1 to vector<8x32xi1>
    %false_16 = arith.constant false
    %18 = vector.broadcast %false_16 : i1 to vector<8x32xi1>
    %false_17 = arith.constant false
    %19 = vector.broadcast %false_17 : i1 to vector<8x8xi1>
    %cst_18 = arith.constant 0.000000e+00 : f32
    %20 = vector.broadcast %cst_18 : f32 to vector<8x8xf32>
    %21 = vector.extract_strided_slice %5 {offsets = [0, 0], sizes = [8, 32], strides = [1, 1]} : vector<64x32xf32> to vector<8x32xf32>
    %cst_19 = arith.constant 5.000000e-01 : f32
    %22 = vector.broadcast %cst_19 : f32 to vector<8x32xf32>
    %23 = arith.mulf %22, %14 : vector<8x32xf32>
    %24 = arith.addf %23, %21 : vector<8x32xf32>
    %25 = arith.select %17, %21, %24 : vector<8x32xi1>, vector<8x32xf32>
    %cst_20 = arith.constant 5.000000e-01 : f32
    %26 = vector.broadcast %cst_20 : f32 to vector<8x32xf32>
    %27 = arith.cmpf ogt, %25, %26 : vector<8x32xf32>
    %28 = arith.extui %27 : vector<8x32xi1> to vector<8x32xi32>
    %29 = arith.sitofp %28 : vector<8x32xi32> to vector<8x32xf32>
    %30 = arith.truncf %29 : vector<8x32xf32> to vector<8x32xbf16>
    %cst_21 = arith.constant dense<0.000000e+00> : vector<8x32xf32>
    %31 = tpu.matmul %30, %6, %cst_21 {dimension_numbers = #tpu.dot_dimension_numbers<[1], [0], [0], [1], [0, 0, 1, 1], [], []>} : vector<8x32xbf16>, vector<32x32xbf16>, vector<8x32xf32> -> vector<8x32xf32>
    %32 = arith.addf %31, %10 : vector<8x32xf32>
    %cst_22 = arith.constant 5.000000e-01 : f32
    %33 = vector.broadcast %cst_22 : f32 to vector<8x32xf32>
    %34 = arith.mulf %33, %15 : vector<8x32xf32>
    %35 = arith.addf %34, %32 : vector<8x32xf32>
    %36 = arith.select %18, %32, %35 : vector<8x32xi1>, vector<8x32xf32>
    %cst_23 = arith.constant 5.000000e-01 : f32
    %37 = vector.broadcast %cst_23 : f32 to vector<8x32xf32>
    %38 = arith.cmpf ogt, %36, %37 : vector<8x32xf32>
    %39 = arith.extui %38 : vector<8x32xi1> to vector<8x32xi32>
    %40 = arith.sitofp %39 : vector<8x32xi32> to vector<8x32xf32>
    %41 = arith.truncf %40 : vector<8x32xf32> to vector<8x32xbf16>
    %cst_24 = arith.constant dense<0.000000e+00> : vector<8x8xf32>
    %42 = tpu.matmul %41, %7, %cst_24 {dimension_numbers = #tpu.dot_dimension_numbers<[1], [0], [0], [1], [0, 0, 1, 1], [], []>} : vector<8x32xbf16>, vector<32x8xbf16>, vector<8x8xf32> -> vector<8x8xf32>
    %43 = arith.addf %42, %13 : vector<8x8xf32>
    %cst_25 = arith.constant 5.000000e-01 : f32
    %44 = vector.broadcast %cst_25 : f32 to vector<8x8xf32>
    %45 = arith.mulf %44, %16 : vector<8x8xf32>
    %46 = arith.addf %45, %43 : vector<8x8xf32>
    %47 = arith.select %19, %43, %46 : vector<8x8xi1>, vector<8x8xf32>
    %cst_26 = arith.constant 5.000000e-01 : f32
    %48 = vector.broadcast %cst_26 : f32 to vector<8x8xf32>
    %49 = arith.cmpf ogt, %47, %48 : vector<8x8xf32>
    %50 = arith.extui %49 : vector<8x8xi1> to vector<8x8xi32>
    %51 = arith.sitofp %50 : vector<8x8xi32> to vector<8x8xf32>
    %52 = arith.addf %20, %51 : vector<8x8xf32>
    %53 = vector.extract_strided_slice %5 {offsets = [8, 0], sizes = [8, 32], strides = [1, 1]} : vector<64x32xf32> to vector<8x32xf32>
    %cst_27 = arith.constant 5.000000e-01 : f32
    %54 = vector.broadcast %cst_27 : f32 to vector<8x32xf32>
    %55 = arith.mulf %54, %25 : vector<8x32xf32>
    %56 = arith.addf %55, %53 : vector<8x32xf32>
    %57 = arith.select %27, %53, %56 : vector<8x32xi1>, vector<8x32xf32>
    %cst_28 = arith.constant 5.000000e-01 : f32
    %58 = vector.broadcast %cst_28 : f32 to vector<8x32xf32>
    %59 = arith.cmpf ogt, %57, %58 : vector<8x32xf32>
    %60 = arith.extui %59 : vector<8x32xi1> to vector<8x32xi32>
    %61 = arith.sitofp %60 : vector<8x32xi32> to vector<8x32xf32>
    %62 = arith.truncf %61 : vector<8x32xf32> to vector<8x32xbf16>
    %cst_29 = arith.constant dense<0.000000e+00> : vector<8x32xf32>
    %63 = tpu.matmul %62, %6, %cst_29 {dimension_numbers = #tpu.dot_dimension_numbers<[1], [0], [0], [1], [0, 0, 1, 1], [], []>} : vector<8x32xbf16>, vector<32x32xbf16>, vector<8x32xf32> -> vector<8x32xf32>
    %64 = arith.addf %63, %10 : vector<8x32xf32>
    %cst_30 = arith.constant 5.000000e-01 : f32
    %65 = vector.broadcast %cst_30 : f32 to vector<8x32xf32>
    %66 = arith.mulf %65, %36 : vector<8x32xf32>
    %67 = arith.addf %66, %64 : vector<8x32xf32>
    %68 = arith.select %38, %64, %67 : vector<8x32xi1>, vector<8x32xf32>
    %cst_31 = arith.constant 5.000000e-01 : f32
    %69 = vector.broadcast %cst_31 : f32 to vector<8x32xf32>
    %70 = arith.cmpf ogt, %68, %69 : vector<8x32xf32>
    %71 = arith.extui %70 : vector<8x32xi1> to vector<8x32xi32>
    %72 = arith.sitofp %71 : vector<8x32xi32> to vector<8x32xf32>
    %73 = arith.truncf %72 : vector<8x32xf32> to vector<8x32xbf16>
    %cst_32 = arith.constant dense<0.000000e+00> : vector<8x8xf32>
    %74 = tpu.matmul %73, %7, %cst_32 {dimension_numbers = #tpu.dot_dimension_numbers<[1], [0], [0], [1], [0, 0, 1, 1], [], []>} : vector<8x32xbf16>, vector<32x8xbf16>, vector<8x8xf32> -> vector<8x8xf32>
    %75 = arith.addf %74, %13 : vector<8x8xf32>
    %cst_33 = arith.constant 5.000000e-01 : f32
    %76 = vector.broadcast %cst_33 : f32 to vector<8x8xf32>
    %77 = arith.mulf %76, %47 : vector<8x8xf32>
    %78 = arith.addf %77, %75 : vector<8x8xf32>
    %79 = arith.select %49, %75, %78 : vector<8x8xi1>, vector<8x8xf32>
    %cst_34 = arith.constant 5.000000e-01 : f32
    %80 = vector.broadcast %cst_34 : f32 to vector<8x8xf32>
    %81 = arith.cmpf ogt, %79, %80 : vector<8x8xf32>
    %82 = arith.extui %81 : vector<8x8xi1> to vector<8x8xi32>
    %83 = arith.sitofp %82 : vector<8x8xi32> to vector<8x8xf32>
    %84 = arith.addf %52, %83 : vector<8x8xf32>
    %85 = vector.extract_strided_slice %5 {offsets = [16, 0], sizes = [8, 32], strides = [1, 1]} : vector<64x32xf32> to vector<8x32xf32>
    %cst_35 = arith.constant 5.000000e-01 : f32
    %86 = vector.broadcast %cst_35 : f32 to vector<8x32xf32>
    %87 = arith.mulf %86, %57 : vector<8x32xf32>
    %88 = arith.addf %87, %85 : vector<8x32xf32>
    %89 = arith.select %59, %85, %88 : vector<8x32xi1>, vector<8x32xf32>
    %cst_36 = arith.constant 5.000000e-01 : f32
    %90 = vector.broadcast %cst_36 : f32 to vector<8x32xf32>
    %91 = arith.cmpf ogt, %89, %90 : vector<8x32xf32>
    %92 = arith.extui %91 : vector<8x32xi1> to vector<8x32xi32>
    %93 = arith.sitofp %92 : vector<8x32xi32> to vector<8x32xf32>
    %94 = arith.truncf %93 : vector<8x32xf32> to vector<8x32xbf16>
    %cst_37 = arith.constant dense<0.000000e+00> : vector<8x32xf32>
    %95 = tpu.matmul %94, %6, %cst_37 {dimension_numbers = #tpu.dot_dimension_numbers<[1], [0], [0], [1], [0, 0, 1, 1], [], []>} : vector<8x32xbf16>, vector<32x32xbf16>, vector<8x32xf32> -> vector<8x32xf32>
    %96 = arith.addf %95, %10 : vector<8x32xf32>
    %cst_38 = arith.constant 5.000000e-01 : f32
    %97 = vector.broadcast %cst_38 : f32 to vector<8x32xf32>
    %98 = arith.mulf %97, %68 : vector<8x32xf32>
    %99 = arith.addf %98, %96 : vector<8x32xf32>
    %100 = arith.select %70, %96, %99 : vector<8x32xi1>, vector<8x32xf32>
    %cst_39 = arith.constant 5.000000e-01 : f32
    %101 = vector.broadcast %cst_39 : f32 to vector<8x32xf32>
    %102 = arith.cmpf ogt, %100, %101 : vector<8x32xf32>
    %103 = arith.extui %102 : vector<8x32xi1> to vector<8x32xi32>
    %104 = arith.sitofp %103 : vector<8x32xi32> to vector<8x32xf32>
    %105 = arith.truncf %104 : vector<8x32xf32> to vector<8x32xbf16>
    %cst_40 = arith.constant dense<0.000000e+00> : vector<8x8xf32>
    %106 = tpu.matmul %105, %7, %cst_40 {dimension_numbers = #tpu.dot_dimension_numbers<[1], [0], [0], [1], [0, 0, 1, 1], [], []>} : vector<8x32xbf16>, vector<32x8xbf16>, vector<8x8xf32> -> vector<8x8xf32>
    %107 = arith.addf %106, %13 : vector<8x8xf32>
    %cst_41 = arith.constant 5.000000e-01 : f32
    %108 = vector.broadcast %cst_41 : f32 to vector<8x8xf32>
    %109 = arith.mulf %108, %79 : vector<8x8xf32>
    %110 = arith.addf %109, %107 : vector<8x8xf32>
    %111 = arith.select %81, %107, %110 : vector<8x8xi1>, vector<8x8xf32>
    %cst_42 = arith.constant 5.000000e-01 : f32
    %112 = vector.broadcast %cst_42 : f32 to vector<8x8xf32>
    %113 = arith.cmpf ogt, %111, %112 : vector<8x8xf32>
    %114 = arith.extui %113 : vector<8x8xi1> to vector<8x8xi32>
    %115 = arith.sitofp %114 : vector<8x8xi32> to vector<8x8xf32>
    %116 = arith.addf %84, %115 : vector<8x8xf32>
    %117 = vector.extract_strided_slice %5 {offsets = [24, 0], sizes = [8, 32], strides = [1, 1]} : vector<64x32xf32> to vector<8x32xf32>
    %cst_43 = arith.constant 5.000000e-01 : f32
    %118 = vector.broadcast %cst_43 : f32 to vector<8x32xf32>
    %119 = arith.mulf %118, %89 : vector<8x32xf32>
    %120 = arith.addf %119, %117 : vector<8x32xf32>
    %121 = arith.select %91, %117, %120 : vector<8x32xi1>, vector<8x32xf32>
    %cst_44 = arith.constant 5.000000e-01 : f32
    %122 = vector.broadcast %cst_44 : f32 to vector<8x32xf32>
    %123 = arith.cmpf ogt, %121, %122 : vector<8x32xf32>
    %124 = arith.extui %123 : vector<8x32xi1> to vector<8x32xi32>
    %125 = arith.sitofp %124 : vector<8x32xi32> to vector<8x32xf32>
    %126 = arith.truncf %125 : vector<8x32xf32> to vector<8x32xbf16>
    %cst_45 = arith.constant dense<0.000000e+00> : vector<8x32xf32>
    %127 = tpu.matmul %126, %6, %cst_45 {dimension_numbers = #tpu.dot_dimension_numbers<[1], [0], [0], [1], [0, 0, 1, 1], [], []>} : vector<8x32xbf16>, vector<32x32xbf16>, vector<8x32xf32> -> vector<8x32xf32>
    %128 = arith.addf %127, %10 : vector<8x32xf32>
    %cst_46 = arith.constant 5.000000e-01 : f32
    %129 = vector.broadcast %cst_46 : f32 to vector<8x32xf32>
    %130 = arith.mulf %129, %100 : vector<8x32xf32>
    %131 = arith.addf %130, %128 : vector<8x32xf32>
    %132 = arith.select %102, %128, %131 : vector<8x32xi1>, vector<8x32xf32>
    %cst_47 = arith.constant 5.000000e-01 : f32
    %133 = vector.broadcast %cst_47 : f32 to vector<8x32xf32>
    %134 = arith.cmpf ogt, %132, %133 : vector<8x32xf32>
    %135 = arith.extui %134 : vector<8x32xi1> to vector<8x32xi32>
    %136 = arith.sitofp %135 : vector<8x32xi32> to vector<8x32xf32>
    %137 = arith.truncf %136 : vector<8x32xf32> to vector<8x32xbf16>
    %cst_48 = arith.constant dense<0.000000e+00> : vector<8x8xf32>
    %138 = tpu.matmul %137, %7, %cst_48 {dimension_numbers = #tpu.dot_dimension_numbers<[1], [0], [0], [1], [0, 0, 1, 1], [], []>} : vector<8x32xbf16>, vector<32x8xbf16>, vector<8x8xf32> -> vector<8x8xf32>
    %139 = arith.addf %138, %13 : vector<8x8xf32>
    %cst_49 = arith.constant 5.000000e-01 : f32
    %140 = vector.broadcast %cst_49 : f32 to vector<8x8xf32>
    %141 = arith.mulf %140, %111 : vector<8x8xf32>
    %142 = arith.addf %141, %139 : vector<8x8xf32>
    %143 = arith.select %113, %139, %142 : vector<8x8xi1>, vector<8x8xf32>
    %cst_50 = arith.constant 5.000000e-01 : f32
    %144 = vector.broadcast %cst_50 : f32 to vector<8x8xf32>
    %145 = arith.cmpf ogt, %143, %144 : vector<8x8xf32>
    %146 = arith.extui %145 : vector<8x8xi1> to vector<8x8xi32>
    %147 = arith.sitofp %146 : vector<8x8xi32> to vector<8x8xf32>
    %148 = arith.addf %116, %147 : vector<8x8xf32>
    %149 = vector.extract_strided_slice %5 {offsets = [32, 0], sizes = [8, 32], strides = [1, 1]} : vector<64x32xf32> to vector<8x32xf32>
    %cst_51 = arith.constant 5.000000e-01 : f32
    %150 = vector.broadcast %cst_51 : f32 to vector<8x32xf32>
    %151 = arith.mulf %150, %121 : vector<8x32xf32>
    %152 = arith.addf %151, %149 : vector<8x32xf32>
    %153 = arith.select %123, %149, %152 : vector<8x32xi1>, vector<8x32xf32>
    %cst_52 = arith.constant 5.000000e-01 : f32
    %154 = vector.broadcast %cst_52 : f32 to vector<8x32xf32>
    %155 = arith.cmpf ogt, %153, %154 : vector<8x32xf32>
    %156 = arith.extui %155 : vector<8x32xi1> to vector<8x32xi32>
    %157 = arith.sitofp %156 : vector<8x32xi32> to vector<8x32xf32>
    %158 = arith.truncf %157 : vector<8x32xf32> to vector<8x32xbf16>
    %cst_53 = arith.constant dense<0.000000e+00> : vector<8x32xf32>
    %159 = tpu.matmul %158, %6, %cst_53 {dimension_numbers = #tpu.dot_dimension_numbers<[1], [0], [0], [1], [0, 0, 1, 1], [], []>} : vector<8x32xbf16>, vector<32x32xbf16>, vector<8x32xf32> -> vector<8x32xf32>
    %160 = arith.addf %159, %10 : vector<8x32xf32>
    %cst_54 = arith.constant 5.000000e-01 : f32
    %161 = vector.broadcast %cst_54 : f32 to vector<8x32xf32>
    %162 = arith.mulf %161, %132 : vector<8x32xf32>
    %163 = arith.addf %162, %160 : vector<8x32xf32>
    %164 = arith.select %134, %160, %163 : vector<8x32xi1>, vector<8x32xf32>
    %cst_55 = arith.constant 5.000000e-01 : f32
    %165 = vector.broadcast %cst_55 : f32 to vector<8x32xf32>
    %166 = arith.cmpf ogt, %164, %165 : vector<8x32xf32>
    %167 = arith.extui %166 : vector<8x32xi1> to vector<8x32xi32>
    %168 = arith.sitofp %167 : vector<8x32xi32> to vector<8x32xf32>
    %169 = arith.truncf %168 : vector<8x32xf32> to vector<8x32xbf16>
    %cst_56 = arith.constant dense<0.000000e+00> : vector<8x8xf32>
    %170 = tpu.matmul %169, %7, %cst_56 {dimension_numbers = #tpu.dot_dimension_numbers<[1], [0], [0], [1], [0, 0, 1, 1], [], []>} : vector<8x32xbf16>, vector<32x8xbf16>, vector<8x8xf32> -> vector<8x8xf32>
    %171 = arith.addf %170, %13 : vector<8x8xf32>
    %cst_57 = arith.constant 5.000000e-01 : f32
    %172 = vector.broadcast %cst_57 : f32 to vector<8x8xf32>
    %173 = arith.mulf %172, %143 : vector<8x8xf32>
    %174 = arith.addf %173, %171 : vector<8x8xf32>
    %175 = arith.select %145, %171, %174 : vector<8x8xi1>, vector<8x8xf32>
    %cst_58 = arith.constant 5.000000e-01 : f32
    %176 = vector.broadcast %cst_58 : f32 to vector<8x8xf32>
    %177 = arith.cmpf ogt, %175, %176 : vector<8x8xf32>
    %178 = arith.extui %177 : vector<8x8xi1> to vector<8x8xi32>
    %179 = arith.sitofp %178 : vector<8x8xi32> to vector<8x8xf32>
    %180 = arith.addf %148, %179 : vector<8x8xf32>
    %181 = vector.extract_strided_slice %5 {offsets = [40, 0], sizes = [8, 32], strides = [1, 1]} : vector<64x32xf32> to vector<8x32xf32>
    %cst_59 = arith.constant 5.000000e-01 : f32
    %182 = vector.broadcast %cst_59 : f32 to vector<8x32xf32>
    %183 = arith.mulf %182, %153 : vector<8x32xf32>
    %184 = arith.addf %183, %181 : vector<8x32xf32>
    %185 = arith.select %155, %181, %184 : vector<8x32xi1>, vector<8x32xf32>
    %cst_60 = arith.constant 5.000000e-01 : f32
    %186 = vector.broadcast %cst_60 : f32 to vector<8x32xf32>
    %187 = arith.cmpf ogt, %185, %186 : vector<8x32xf32>
    %188 = arith.extui %187 : vector<8x32xi1> to vector<8x32xi32>
    %189 = arith.sitofp %188 : vector<8x32xi32> to vector<8x32xf32>
    %190 = arith.truncf %189 : vector<8x32xf32> to vector<8x32xbf16>
    %cst_61 = arith.constant dense<0.000000e+00> : vector<8x32xf32>
    %191 = tpu.matmul %190, %6, %cst_61 {dimension_numbers = #tpu.dot_dimension_numbers<[1], [0], [0], [1], [0, 0, 1, 1], [], []>} : vector<8x32xbf16>, vector<32x32xbf16>, vector<8x32xf32> -> vector<8x32xf32>
    %192 = arith.addf %191, %10 : vector<8x32xf32>
    %cst_62 = arith.constant 5.000000e-01 : f32
    %193 = vector.broadcast %cst_62 : f32 to vector<8x32xf32>
    %194 = arith.mulf %193, %164 : vector<8x32xf32>
    %195 = arith.addf %194, %192 : vector<8x32xf32>
    %196 = arith.select %166, %192, %195 : vector<8x32xi1>, vector<8x32xf32>
    %cst_63 = arith.constant 5.000000e-01 : f32
    %197 = vector.broadcast %cst_63 : f32 to vector<8x32xf32>
    %198 = arith.cmpf ogt, %196, %197 : vector<8x32xf32>
    %199 = arith.extui %198 : vector<8x32xi1> to vector<8x32xi32>
    %200 = arith.sitofp %199 : vector<8x32xi32> to vector<8x32xf32>
    %201 = arith.truncf %200 : vector<8x32xf32> to vector<8x32xbf16>
    %cst_64 = arith.constant dense<0.000000e+00> : vector<8x8xf32>
    %202 = tpu.matmul %201, %7, %cst_64 {dimension_numbers = #tpu.dot_dimension_numbers<[1], [0], [0], [1], [0, 0, 1, 1], [], []>} : vector<8x32xbf16>, vector<32x8xbf16>, vector<8x8xf32> -> vector<8x8xf32>
    %203 = arith.addf %202, %13 : vector<8x8xf32>
    %cst_65 = arith.constant 5.000000e-01 : f32
    %204 = vector.broadcast %cst_65 : f32 to vector<8x8xf32>
    %205 = arith.mulf %204, %175 : vector<8x8xf32>
    %206 = arith.addf %205, %203 : vector<8x8xf32>
    %207 = arith.select %177, %203, %206 : vector<8x8xi1>, vector<8x8xf32>
    %cst_66 = arith.constant 5.000000e-01 : f32
    %208 = vector.broadcast %cst_66 : f32 to vector<8x8xf32>
    %209 = arith.cmpf ogt, %207, %208 : vector<8x8xf32>
    %210 = arith.extui %209 : vector<8x8xi1> to vector<8x8xi32>
    %211 = arith.sitofp %210 : vector<8x8xi32> to vector<8x8xf32>
    %212 = arith.addf %180, %211 : vector<8x8xf32>
    %213 = vector.extract_strided_slice %5 {offsets = [48, 0], sizes = [8, 32], strides = [1, 1]} : vector<64x32xf32> to vector<8x32xf32>
    %cst_67 = arith.constant 5.000000e-01 : f32
    %214 = vector.broadcast %cst_67 : f32 to vector<8x32xf32>
    %215 = arith.mulf %214, %185 : vector<8x32xf32>
    %216 = arith.addf %215, %213 : vector<8x32xf32>
    %217 = arith.select %187, %213, %216 : vector<8x32xi1>, vector<8x32xf32>
    %cst_68 = arith.constant 5.000000e-01 : f32
    %218 = vector.broadcast %cst_68 : f32 to vector<8x32xf32>
    %219 = arith.cmpf ogt, %217, %218 : vector<8x32xf32>
    %220 = arith.extui %219 : vector<8x32xi1> to vector<8x32xi32>
    %221 = arith.sitofp %220 : vector<8x32xi32> to vector<8x32xf32>
    %222 = arith.truncf %221 : vector<8x32xf32> to vector<8x32xbf16>
    %cst_69 = arith.constant dense<0.000000e+00> : vector<8x32xf32>
    %223 = tpu.matmul %222, %6, %cst_69 {dimension_numbers = #tpu.dot_dimension_numbers<[1], [0], [0], [1], [0, 0, 1, 1], [], []>} : vector<8x32xbf16>, vector<32x32xbf16>, vector<8x32xf32> -> vector<8x32xf32>
    %224 = arith.addf %223, %10 : vector<8x32xf32>
    %cst_70 = arith.constant 5.000000e-01 : f32
    %225 = vector.broadcast %cst_70 : f32 to vector<8x32xf32>
    %226 = arith.mulf %225, %196 : vector<8x32xf32>
    %227 = arith.addf %226, %224 : vector<8x32xf32>
    %228 = arith.select %198, %224, %227 : vector<8x32xi1>, vector<8x32xf32>
    %cst_71 = arith.constant 5.000000e-01 : f32
    %229 = vector.broadcast %cst_71 : f32 to vector<8x32xf32>
    %230 = arith.cmpf ogt, %228, %229 : vector<8x32xf32>
    %231 = arith.extui %230 : vector<8x32xi1> to vector<8x32xi32>
    %232 = arith.sitofp %231 : vector<8x32xi32> to vector<8x32xf32>
    %233 = arith.truncf %232 : vector<8x32xf32> to vector<8x32xbf16>
    %cst_72 = arith.constant dense<0.000000e+00> : vector<8x8xf32>
    %234 = tpu.matmul %233, %7, %cst_72 {dimension_numbers = #tpu.dot_dimension_numbers<[1], [0], [0], [1], [0, 0, 1, 1], [], []>} : vector<8x32xbf16>, vector<32x8xbf16>, vector<8x8xf32> -> vector<8x8xf32>
    %235 = arith.addf %234, %13 : vector<8x8xf32>
    %cst_73 = arith.constant 5.000000e-01 : f32
    %236 = vector.broadcast %cst_73 : f32 to vector<8x8xf32>
    %237 = arith.mulf %236, %207 : vector<8x8xf32>
    %238 = arith.addf %237, %235 : vector<8x8xf32>
    %239 = arith.select %209, %235, %238 : vector<8x8xi1>, vector<8x8xf32>
    %cst_74 = arith.constant 5.000000e-01 : f32
    %240 = vector.broadcast %cst_74 : f32 to vector<8x8xf32>
    %241 = arith.cmpf ogt, %239, %240 : vector<8x8xf32>
    %242 = arith.extui %241 : vector<8x8xi1> to vector<8x8xi32>
    %243 = arith.sitofp %242 : vector<8x8xi32> to vector<8x8xf32>
    %244 = arith.addf %212, %243 : vector<8x8xf32>
    %245 = vector.extract_strided_slice %5 {offsets = [56, 0], sizes = [8, 32], strides = [1, 1]} : vector<64x32xf32> to vector<8x32xf32>
    %cst_75 = arith.constant 5.000000e-01 : f32
    %246 = vector.broadcast %cst_75 : f32 to vector<8x32xf32>
    %247 = arith.mulf %246, %217 : vector<8x32xf32>
    %248 = arith.addf %247, %245 : vector<8x32xf32>
    %249 = arith.select %219, %245, %248 : vector<8x32xi1>, vector<8x32xf32>
    %cst_76 = arith.constant 5.000000e-01 : f32
    %250 = vector.broadcast %cst_76 : f32 to vector<8x32xf32>
    %251 = arith.cmpf ogt, %249, %250 : vector<8x32xf32>
    %252 = arith.extui %251 : vector<8x32xi1> to vector<8x32xi32>
    %253 = arith.sitofp %252 : vector<8x32xi32> to vector<8x32xf32>
    %254 = arith.truncf %253 : vector<8x32xf32> to vector<8x32xbf16>
    %cst_77 = arith.constant dense<0.000000e+00> : vector<8x32xf32>
    %255 = tpu.matmul %254, %6, %cst_77 {dimension_numbers = #tpu.dot_dimension_numbers<[1], [0], [0], [1], [0, 0, 1, 1], [], []>} : vector<8x32xbf16>, vector<32x32xbf16>, vector<8x32xf32> -> vector<8x32xf32>
    %256 = arith.addf %255, %10 : vector<8x32xf32>
    %cst_78 = arith.constant 5.000000e-01 : f32
    %257 = vector.broadcast %cst_78 : f32 to vector<8x32xf32>
    %258 = arith.mulf %257, %228 : vector<8x32xf32>
    %259 = arith.addf %258, %256 : vector<8x32xf32>
    %260 = arith.select %230, %256, %259 : vector<8x32xi1>, vector<8x32xf32>
    %cst_79 = arith.constant 5.000000e-01 : f32
    %261 = vector.broadcast %cst_79 : f32 to vector<8x32xf32>
    %262 = arith.cmpf ogt, %260, %261 : vector<8x32xf32>
    %263 = arith.extui %262 : vector<8x32xi1> to vector<8x32xi32>
    %264 = arith.sitofp %263 : vector<8x32xi32> to vector<8x32xf32>
    %265 = arith.truncf %264 : vector<8x32xf32> to vector<8x32xbf16>
    %cst_80 = arith.constant dense<0.000000e+00> : vector<8x8xf32>
    %266 = tpu.matmul %265, %7, %cst_80 {dimension_numbers = #tpu.dot_dimension_numbers<[1], [0], [0], [1], [0, 0, 1, 1], [], []>} : vector<8x32xbf16>, vector<32x8xbf16>, vector<8x8xf32> -> vector<8x8xf32>
    %267 = arith.addf %266, %13 : vector<8x8xf32>
    %cst_81 = arith.constant 5.000000e-01 : f32
    %268 = vector.broadcast %cst_81 : f32 to vector<8x8xf32>
    %269 = arith.mulf %268, %239 : vector<8x8xf32>
    %270 = arith.addf %269, %267 : vector<8x8xf32>
    %271 = arith.select %241, %267, %270 : vector<8x8xi1>, vector<8x8xf32>
    %cst_82 = arith.constant 5.000000e-01 : f32
    %272 = vector.broadcast %cst_82 : f32 to vector<8x8xf32>
    %273 = arith.cmpf ogt, %271, %272 : vector<8x8xf32>
    %274 = arith.extui %273 : vector<8x8xi1> to vector<8x8xi32>
    %275 = arith.sitofp %274 : vector<8x8xi32> to vector<8x8xf32>
    %276 = arith.addf %244, %275 : vector<8x8xf32>
    %c0_83 = arith.constant 0 : index
    %c0_84 = arith.constant 0 : index
    %277 = vector.load %arg8[%c0_83, %c0_84] : memref<8x8xf32, #tpu.memory_space<vmem>>, vector<8x8xf32>
    tpu.vector_store %arg8[%c0_83, %c0_84], %276 {strides = array<i32>} : memref<8x8xf32, #tpu.memory_space<vmem>>, vector<8x8xf32>,
    return
  }
  func.func @transform_0(%arg0: i32) -> (i32, i32) {
    %c0_i32 = arith.constant 0 : i32
    %c0_i32_0 = arith.constant 0 : i32
    return %arg0, %c0_i32 : i32, i32
  }
  func.func @transform_1(%arg0: i32) -> (i32, i32) {
    %c0_i32 = arith.constant 0 : i32
    %c0_i32_0 = arith.constant 0 : i32
    %c0_i32_1 = arith.constant 0 : i32
    return %c0_i32, %c0_i32_0 : i32, i32
  }
  func.func @transform_2(%arg0: i32) -> (i32, i32) {
    %c0_i32 = arith.constant 0 : i32
    %c0_i32_0 = arith.constant 0 : i32
    %c0_i32_1 = arith.constant 0 : i32
    return %c0_i32, %c0_i32_0 : i32, i32
  }
  func.func @transform_3(%arg0: i32) -> (i32, i32) {
    %c0_i32 = arith.constant 0 : i32
    %c0_i32_0 = arith.constant 0 : i32
    %c0_i32_1 = arith.constant 0 : i32
    return %c0_i32, %c0_i32_0 : i32, i32
  }
  func.func @transform_4(%arg0: i32) -> (i32, i32) {
    %c0_i32 = arith.constant 0 : i32
    %c0_i32_0 = arith.constant 0 : i32
    %c0_i32_1 = arith.constant 0 : i32
    return %c0_i32, %c0_i32_0 : i32, i32
  }
  func.func @transform_5(%arg0: i32) -> (i32, i32) {
    %c0_i32 = arith.constant 0 : i32
    %c0_i32_0 = arith.constant 0 : i32
    %c0_i32_1 = arith.constant 0 : i32
    return %c0_i32, %c0_i32_0 : i32, i32
  }
  func.func @transform_6(%arg0: i32) -> (i32, i32) {
    %c0_i32 = arith.constant 0 : i32
    %c0_i32_0 = arith.constant 0 : i32
    %c0_i32_1 = arith.constant 0 : i32
    return %c0_i32, %c0_i32_0 : i32, i32
  }
  func.func @transform_7(%arg0: i32) -> (i32, i32) {
    %c0_i32 = arith.constant 0 : i32
    %c0_i32_0 = arith.constant 0 : i32
    return %arg0, %c0_i32 : i32, i32
  }
}

</mosaic_0001>

<bundles_post_ra>
// kernel: tpu_custom_call.1
= control target key start
LH: loop header
LB: loop body
LE: loop exit
PB: predicated region body
PF: predicated region fallthrough
CT: control target
= control target key end

     0   :  { %vm68_vm0 = vcmask 130048   ;;  %s928_s0 = inlined_call_operand.vmem [shape: bf16[64,16], index: 0, kind: input, shape index: {}]   ;;  %s929_s1 = inlined_call_operand.vmem [shape: bf16[16,32], index: 1, kind: input, shape index: {}]   ;;  %s930_s2 = inlined_call_operand.vmem [shape: bf16[32,32], index: 2, kind: input, shape index: {}]   ;;  %s931_s3 = inlined_call_operand.vmem [shape: bf16[32,8], index: 3, kind: input, shape index: {}]   ;;  %s932_s4 = inlined_call_operand.vmem [shape: f32[1,32], index: 4, kind: input, shape index: {}]   ;;  %s933_s5 = inlined_call_operand.vmem [shape: f32[1,32], index: 5, kind: input, shape index: {}]   ;;  %s934_s6 = inlined_call_operand.vmem [shape: f32[1,8], index: 6, kind: input, shape index: {}]   ;;  %s935_s7 = inlined_call_operand.hbm [shape: f32[8,8], index: 7, kind: output, shape index: {}]  }
   0x1   :  { %v671_v0 = vld [vmem:[%s929_s1] sm:$0xff] }
   0x2   :  { %v667_v1 = vld [vmem:[%s928_s0] sm:$0xff]  ;;  %88 = vmatpush.bf16.msra.mxu0 %v671_v0 }
   0x3   :  { %12 = vsyncpa [#allocation3], 0  ;;  %v668_v2 = vld [vmem:[%s928_s0 + $0x8] sm:$0xff]  ;;  %v669_v3 = vld [vmem:[%s928_s0 + $0x10] sm:$0xff]  ;;  %v707_v10 = vmov 0.0   ;;  %vm143_vm2 = vcmask 261120  }
   0x4   :  { %v670_v4 = vld [vmem:[%s928_s0 + $0x18] sm:$0xff]  ;;  %v767_v5 = vld [vmem:[%s930_s2 + $0x8] sm:$0xff]  ;;  %v775_v6 = vld [vmem:[%s930_s2] sm:$0xff]  ;;  %s578_s22 = sshll.u32 %s935_s7, 4  ;;  %s579_s22 = int_to_ptr.hbm [resolvable:$true] %s578_s22 }
   0x5   :  { %607 = vmatmul.msk.bf16.vlgmr.msra.gmra.mxu0 %vm68_vm0, %v667_v1  ;;  %153 = vmatpush.bf16.msra.mxu1 %v767_v5  ;;  %v678_v7 = vld [vmem:[%s932_s4] ss:$0 sm:$0xff]  ;;  %v813_v52 = vld [vmem:[%s931_s3 + $0x8] sm:$0xff] }
   0x6   :  { %214 = vmatpush.bf16.msra.mxu3 %v767_v5  ;;  %479 = vmatpush.bf16.msrb.mxu0 %v767_v5  ;;  %v821_v53 = vld [vmem:[%s931_s3] sm:$0xff] }
   0x7   :  { %186 = vmatpush.bf16.msra.mxu2 %v813_v52  ;;  %v835_v54 = vld [vmem:[%s933_s5] ss:$0 sm:$0xff] }
   0x9   :  { %154 = vmatpush.bf16.msra.mxu1 %v775_v6 }
   0xa   :  { %215 = vmatpush.bf16.msra.mxu3 %v775_v6  ;;  %480 = vmatpush.bf16.msrb.mxu0 %v775_v6 }
   0xb   :  { %187 = vmatpush.bf16.msra.mxu2 %v821_v53 }
   0xd   :  { %237 = vmatpush.bf16.msrb.mxu1 %v813_v52 }
   0xe   :  { %290 = vmatpush.bf16.msrb.mxu3 %v813_v52 }
   0xf   :  { %267 = vmatpush.bf16.msrb.mxu2 %v767_v5 }
  0x11   :  { %238 = vmatpush.bf16.msrb.mxu1 %v821_v53 }
  0x12   :  { %291 = vmatpush.bf16.msrb.mxu3 %v821_v53 }
  0x13   :  { %268 = vmatpush.bf16.msrb.mxu2 %v775_v6 }
  0x15   :  { %608 = vmatmul.msk.bf16.gmra.mxu0 %vm68_vm0, %v668_v2 }
  0x25   :  { %609 = vmatmul.msk.bf16.gmra.mxu0 %vm68_vm0, %v669_v3 }
  0x35   :  { %610 = vmatmul.msk.bf16.gmra.mxu0 %vm68_vm0, %v670_v4 }
  0x82   :  { %v90_v8 = vpop.f32.mrf.mxu0 }
  0x83   :  { %v91_v9 = vadd.f32 %v678_v7, %v90_v8 }
  0x85   :  { %vm127_vm1 = vcmp.gt.f32.partialorder %v91_v9, 0.5  ;;  %v198_v14 = vmul.f32 0.5, %v91_v9 }
  0x86   :  { %v611_v11 = vsel %vm127_vm1, 1.0, %v707_v10 }
  0x87   :  { %v130_v12 = vpack.c.bf16 %v611_v11, %v611_v11 }
  0x89   :  { %620 = vmatmul.msk.bf16.vlgmr.msra.gmra.mxu1 %vm143_vm2, %v130_v12 }
  0x8a   :  { %v92_v13 = vpop.f32.mrf.mxu0  ;;  %320 = vmatpush.bf16.msra.mxu1 %v767_v5 }
  0x8b   :  { %v93_v15 = vadd.f32 %v678_v7, %v92_v13 }
  0x8d   :  { %v199_v16 = vadd.f32 %v198_v14, %v93_v15  ;;  %v864_v14 = vld [vmem:[%s934_s6] ss:$0 sm:$0xff]  ;;  %s708_s6 = smov [#allocation2]  }
  0x8e   :  { %321 = vmatpush.bf16.msra.mxu1 %v775_v6  ;;  %s576_s19 = sshll.u32 %s708_s6, 4  ;;  %s577_s19 = int_to_ptr.vmem [resolvable:$true] %s576_s19 }
  0x8f   :  { %v200_v17 = vsel %vm127_vm1, %v93_v15, %v199_v16 }
  0x90   :  { %vm201_vm3 = vcmp.gt.f32.partialorder %v200_v17, 0.5  ;;  %v251_v22 = vmul.f32 0.5, %v200_v17 }
  0x91   :  { %v632_v18 = vsel %vm201_vm3, 1.0, %v707_v10 }
  0x92   :  { %v95_v19 = vpop.f32.mrf.mxu0  ;;  %v204_v20 = vpack.c.bf16 %v632_v18, %v632_v18 }
  0x93   :  { %v96_v21 = vadd.f32 %v678_v7, %v95_v19 }
  0x94   :  { %633 = vmatmul.msk.bf16.vlgmr.msra.gmra.mxu3 %vm143_vm2, %v204_v20 }
  0x95   :  { %v252_v23 = vadd.f32 %v251_v22, %v96_v21  ;;  %373 = vmatpush.bf16.msra.mxu3 %v767_v5 }
  0x97   :  { %v253_v24 = vsel %vm201_vm3, %v96_v21, %v252_v23 }
  0x98   :  { %v304_v27 = vmul.f32 0.5, %v253_v24  ;;  %vm254_vm4 = vcmp.gt.f32.partialorder %v253_v24, 0.5 }
  0x99   :  { %374 = vmatpush.bf16.msra.mxu3 %v775_v6  ;;  %v637_v61 = vsel %vm254_vm4, 1.0, %v707_v10 }
  0x9a   :  { %v97_v25 = vpop.f32.mrf.mxu0  ;;  %v257_v1 = vpack.c.bf16 %v637_v61, %v637_v61 }
  0x9b   :  { %v98_v26 = vadd.f32 %v678_v7, %v97_v25 }
  0x9d   :  { %v305_v28 = vadd.f32 %v304_v27, %v98_v26 }
  0x9f   :  { %v788_v29 = vsel %vm254_vm4, %v98_v26, %v305_v28 }
  0xa0   :  { %v357_v32 = vmul.f32 0.5, %v788_v29  ;;  %vm307_vm5 = vcmp.gt.f32.partialorder %v788_v29, 0.5 }
  0xa1   :  { %v642_v8 = vsel %vm307_vm5, 1.0, %v707_v10 }
  0xa2   :  { %v100_v30 = vpop.f32.mrf.mxu0  ;;  %v310_v9 = vpack.c.bf16 %v642_v8, %v642_v8 }
  0xa3   :  { %v101_v31 = vadd.f32 %v678_v7, %v100_v30 }
  0xa5   :  { %v358_v33 = vadd.f32 %v357_v32, %v101_v31 }
  0xa7   :  { %v794_v34 = vsel %vm307_vm5, %v101_v31, %v358_v33 }
  0xa8   :  { %v410_v37 = vmul.f32 0.5, %v794_v34  ;;  %vm360_vm6 = vcmp.gt.f32.partialorder %v794_v34, 0.5 }
  0xaa   :  { %v102_v35 = vpop.f32.mrf.mxu0 }
  0xab   :  { %v103_v36 = vadd.f32 %v678_v7, %v102_v35 }
  0xad   :  { %v411_v38 = vadd.f32 %v410_v37, %v103_v36 }
  0xaf   :  { %v800_v39 = vsel %vm360_vm6, %v103_v36, %v411_v38 }
  0xb0   :  { %v463_v42 = vmul.f32 0.5, %v800_v39  ;;  %vm413_vm7 = vcmp.gt.f32.partialorder %v800_v39, 0.5 }
  0xb1   :  { %v652_v34 = vsel %vm413_vm7, 1.0, %v707_v10 }
  0xb2   :  { %v105_v40 = vpop.f32.mrf.mxu0 }
  0xb3   :  { %v106_v41 = vadd.f32 %v678_v7, %v105_v40 }
  0xb5   :  { %v464_v43 = vadd.f32 %v463_v42, %v106_v41 }
  0xb7   :  { %v465_v44 = vsel %vm413_vm7, %v106_v41, %v464_v43  ;;  %v647_v41 = vsel %vm360_vm6, 1.0, %v707_v10 }
  0xb8   :  { %vm466_vm8 = vcmp.gt.f32.partialorder %v465_v44, 0.5  ;;  %v516_v49 = vmul.f32 0.5, %v465_v44 }
  0xb9   :  { %v657_v45 = vsel %vm466_vm8, 1.0, %v707_v10 }
  0xba   :  { %v469_v46 = vpack.c.bf16 %v657_v45, %v657_v45  ;;  %v107_v47 = vpop.f32.mrf.mxu0  ;;  %v363_v45 = vpack.c.bf16 %v647_v41, %v647_v41 }
  0xbb   :  { %v108_v48 = vadd.f32 %v678_v7, %v107_v47 }
  0xbc   :  { %658 = vmatmul.msk.bf16.vlgmr.msrb.gmra.mxu0 %vm143_vm2, %v469_v46  ;;  %v416_v46 = vpack.c.bf16 %v652_v34, %v652_v34 }
  0xbd   :  { %v517_v50 = vadd.f32 %v516_v49, %v108_v48 }
  0xbf   :  { %v808_v51 = vsel %vm466_vm8, %v108_v48, %v517_v50 }
  0xc0   :  { %vm519_vm15 = vcmp.gt.f32.partialorder %v808_v51, 0.5 }
  0xc1   :  { %v662_v47 = vsel %vm519_vm15, 1.0, %v707_v10 }
 0x106   :  { %v156_v55 = vpop.f32.mrf.mxu1 }
 0x107   :  { %v157_v56 = vadd.f32 %v835_v54, %v156_v55 }
 0x109   :  { %vm161_vm9 = vcmp.gt.f32.partialorder %v157_v56, 0.5  ;;  %v221_v62 = vmul.f32 0.5, %v157_v56 }
 0x10a   :  { %v621_v57 = vsel %vm161_vm9, 1.0, %v707_v10 }
 0x10b   :  { %v164_v58 = vpack.c.bf16 %v621_v57, %v621_v57 }
 0x10d   :  { %630 = vmatmul.msk.bf16.vlgmr.msra.gmra.mxu2 %vm143_vm2, %v164_v58 }
 0x10e   :  { %v158_v59 = vpop.f32.mrf.mxu1  ;;  %343 = vmatpush.bf16.msra.mxu2 %v813_v52 }
 0x112   :  { %344 = vmatpush.bf16.msra.mxu2 %v821_v53 }
 0x117   :  { %v217_v60 = vpop.f32.mrf.mxu3 }
 0x118   :  { %v218_v63 = vadd.f32 %v835_v54, %v217_v60 }
 0x11a   :  { %v222_v0 = vadd.f32 %v221_v62, %v218_v63 }
 0x11c   :  { %v223_v2 = vsel %vm161_vm9, %v218_v63, %v222_v0 }
 0x11d   :  { %vm224_vm10 = vcmp.gt.f32.partialorder %v223_v2, 0.5  ;;  %638 = vmatmul.msk.bf16.vlgmr.msrb.gmra.mxu2 %vm143_vm2, %v257_v1  ;;  %v274_v23 = vmul.f32 0.5, %v223_v2 }
 0x11e   :  { %v634_v3 = vsel %vm224_vm10, 1.0, %v707_v10  ;;  %426 = vmatpush.bf16.msrb.mxu2 %v767_v5 }
 0x11f   :  { %v227_v4 = vpack.c.bf16 %v634_v3, %v634_v3  ;;  %v219_v7 = vpop.f32.mrf.mxu3 }
 0x121   :  { %635 = vmatmul.msk.bf16.vlgmr.msrb.gmra.mxu1 %vm143_vm2, %v227_v4 }
 0x122   :  { %427 = vmatpush.bf16.msrb.mxu2 %v775_v6  ;;  %396 = vmatpush.bf16.msrb.mxu1 %v813_v52 }
 0x126   :  { %397 = vmatpush.bf16.msrb.mxu1 %v821_v53 }
 0x131   :  { %643 = vmatmul.msk.bf16.vlgmr.msra.gmra.mxu1 %vm143_vm2, %v310_v9 }
 0x132   :  { %502 = vmatpush.bf16.msra.mxu1 %v813_v52 }
 0x136   :  { %503 = vmatpush.bf16.msra.mxu1 %v821_v53 }
 0x139   :  { %v859_v11 = vpop.f32.mrf.mxu0 }
 0x141   :  { %v484_v12 = vpop.f32.mrf.mxu0 }
 0x190   :  { %v189_v13 = vpop.f32.mrf.mxu2 }
 0x191   :  { %v190_v16 = vadd.f32 %v864_v14, %v189_v13 }
 0x193   :  { %v244_v18 = vmul.f32 0.5, %v190_v16  ;;  %vm194_vm11 = vcmp.gt.f32.partialorder %v190_v16, 0.5 }
 0x194   :  { %v631_v26 = vsel %vm194_vm11, 1.0, %v707_v10 }
 0x198   :  { %v191_v15 = vpop.f32.mrf.mxu2 }
 0x19e   :  { %v240_v17 = vpop.f32.mrf.mxu1 }
 0x19f   :  { %v241_v19 = vadd.f32 %v864_v14, %v240_v17  ;;  %v483_v17 = vadd.f32 %v835_v54, %v859_v11 }
 0x1a0   :  { %v270_v20 = vpop.f32.mrf.mxu2 }
 0x1a1   :  { %v245_v21 = vadd.f32 %v244_v18, %v241_v19  ;;  %v271_v22 = vadd.f32 %v835_v54, %v270_v20 }
 0x1a3   :  { %v246_v24 = vsel %vm194_vm11, %v241_v19, %v245_v21  ;;  %v275_v25 = vadd.f32 %v274_v23, %v271_v22 }
 0x1a4   :  { %vm247_vm12 = vcmp.gt.f32.partialorder %v246_v24, 0.5 }
 0x1a5   :  { %v636_v27 = vsel %vm247_vm12, 1.0, %v707_v10  ;;  %v276_v28 = vsel %vm224_vm10, %v271_v22, %v275_v25  ;;  %vm569_vm10 = vcmask 64512  }
 0x1a6   :  { %v250_v29 = vadd.f32 %v636_v27, %v631_v26  ;;  %vm277_vm13 = vcmp.gt.f32.partialorder %v276_v28, 0.5  ;;  %v242_v30 = vpop.f32.mrf.mxu1  ;;  %v327_v37 = vmul.f32 0.5, %v276_v28 }
 0x1a7   :  { %v639_v31 = vsel %vm277_vm13, 1.0, %v707_v10 }
 0x1a8   :  { %v280_v32 = vpack.c.bf16 %v639_v31, %v639_v31  ;;  %v272_v33 = vpop.f32.mrf.mxu2 }
 0x1aa   :  { %640 = vmatmul.msk.bf16.vlgmr.msrb.gmra.mxu3 %vm143_vm2, %v280_v32 }
 0x1ab   :  { %449 = vmatpush.bf16.msrb.mxu3 %v813_v52 }
 0x1ae   :  { %v323_v35 = vpop.f32.mrf.mxu1 }
 0x1af   :  { %v324_v36 = vadd.f32 %v835_v54, %v323_v35  ;;  %450 = vmatpush.bf16.msrb.mxu3 %v821_v53 }
 0x1b1   :  { %v328_v38 = vadd.f32 %v327_v37, %v324_v36 }
 0x1b3   :  { %v329_v40 = vsel %vm277_vm13, %v324_v36, %v328_v38 }
 0x1b4   :  { %vm330_vm14 = vcmp.gt.f32.partialorder %v329_v40, 0.5  ;;  %v380_v61 = vmul.f32 0.5, %v329_v40 }
 0x1b5   :  { %v644_v42 = vsel %vm330_vm14, 1.0, %v707_v10 }
 0x1b6   :  { %v333_v43 = vpack.c.bf16 %v644_v42, %v644_v42  ;;  %v325_v44 = vpop.f32.mrf.mxu1 }
 0x1b8   :  { %645 = vmatmul.msk.bf16.vlgmr.msra.gmra.mxu2 %vm143_vm2, %v333_v43 }
 0x1b9   :  { %532 = vmatpush.bf16.msra.mxu2 %v767_v5  ;;  %v522_v5 = vpack.c.bf16 %v662_v47, %v662_v47 }
 0x1ba   :  { %648 = vmatmul.msk.bf16.vlgmr.msra.gmra.mxu3 %vm143_vm2, %v363_v45 }
 0x1bb   :  { %555 = vmatpush.bf16.msra.mxu3 %v813_v52 }
 0x1bd   :  { %533 = vmatpush.bf16.msra.mxu2 %v775_v6  ;;  %v297_v6 = vmul.f32 0.5, %v246_v24 }
 0x1bf   :  { %556 = vmatpush.bf16.msra.mxu3 %v821_v53 }
 0x1c8   :  { %653 = vmatmul.msk.bf16.vlgmr.msrb.gmra.mxu2 %vm143_vm2, %v416_v46 }
 0x1d8   :  { %663 = vmatmul.msk.bf16.vlgmr.msra.gmra.mxu2 %vm143_vm2, %v522_v5 }
 0x22d   :  { %v293_v48 = vpop.f32.mrf.mxu3 }
 0x22e   :  { %v294_v49 = vadd.f32 %v864_v14, %v293_v48 }
 0x230   :  { %v298_v50 = vadd.f32 %v297_v6, %v294_v49 }
 0x232   :  { %v299_v52 = vsel %vm247_vm12, %v294_v49, %v298_v50 }
 0x233   :  { %vm300_vm0 = vcmp.gt.f32.partialorder %v299_v52, 0.5  ;;  %v350_v57 = vmul.f32 0.5, %v299_v52 }
 0x234   :  { %v641_v39 = vsel %vm300_vm0, 1.0, %v707_v10 }
 0x235   :  { %v303_v53 = vadd.f32 %v641_v39, %v250_v29  ;;  %v295_v55 = vpop.f32.mrf.mxu3 }
 0x23b   :  { %v346_v56 = vpop.f32.mrf.mxu2 }
 0x23c   :  { %v347_v51 = vadd.f32 %v864_v14, %v346_v56 }
 0x23d   :  { %v376_v58 = vpop.f32.mrf.mxu3 }
 0x23e   :  { %v351_v59 = vadd.f32 %v350_v57, %v347_v51  ;;  %v377_v60 = vadd.f32 %v835_v54, %v376_v58 }
 0x240   :  { %v352_v62 = vsel %vm300_vm0, %v347_v51, %v351_v59  ;;  %v381_v63 = vadd.f32 %v380_v61, %v377_v60 }
 0x241   :  { %vm353_vm1 = vcmp.gt.f32.partialorder %v352_v62, 0.5  ;;  %v403_v36 = vmul.f32 0.5, %v352_v62 }
 0x242   :  { %v646_v0 = vsel %vm353_vm1, 1.0, %v707_v10  ;;  %v382_v1 = vsel %vm330_vm14, %v377_v60, %v381_v63 }
 0x243   :  { %v356_v2 = vadd.f32 %v646_v0, %v303_v53  ;;  %vm383_vm3 = vcmp.gt.f32.partialorder %v382_v1, 0.5  ;;  %v348_v3 = vpop.f32.mrf.mxu2  ;;  %v433_v13 = vmul.f32 0.5, %v382_v1 }
 0x244   :  { %v649_v4 = vsel %vm383_vm3, 1.0, %v707_v10 }
 0x245   :  { %v386_v7 = vpack.c.bf16 %v649_v4, %v649_v4  ;;  %v378_v8 = vpop.f32.mrf.mxu3 }
 0x247   :  { %650 = vmatmul.msk.bf16.vlgmr.msrb.gmra.mxu1 %vm143_vm2, %v386_v7 }
 0x24b   :  { %v429_v9 = vpop.f32.mrf.mxu2 }
 0x24c   :  { %v430_v12 = vadd.f32 %v835_v54, %v429_v9 }
 0x24e   :  { %v434_v15 = vadd.f32 %v433_v13, %v430_v12 }
 0x250   :  { %v435_v16 = vsel %vm383_vm3, %v430_v12, %v434_v15 }
 0x251   :  { %vm436_vm4 = vcmp.gt.f32.partialorder %v435_v16, 0.5  ;;  %v486_v18 = vmul.f32 0.5, %v435_v16 }
 0x252   :  { %v654_v19 = vsel %vm436_vm4, 1.0, %v707_v10 }
 0x253   :  { %v439_v20 = vpack.c.bf16 %v654_v19, %v654_v19  ;;  %v487_v21 = vadd.f32 %v486_v18, %v483_v17  ;;  %v431_v22 = vpop.f32.mrf.mxu2 }
 0x255   :  { %v488_v23 = vsel %vm436_vm4, %v483_v17, %v487_v21  ;;  %655 = vmatmul.msk.bf16.vlgmr.msrb.gmra.mxu3 %vm143_vm2, %v439_v20 }
 0x256   :  { %vm489_vm5 = vcmp.gt.f32.partialorder %v488_v23, 0.5  ;;  %v539_v11 = vmul.f32 0.5, %v488_v23 }
 0x257   :  { %v659_v24 = vsel %vm489_vm5, 1.0, %v707_v10 }
 0x258   :  { %v492_v25 = vpack.c.bf16 %v659_v24, %v659_v24 }
 0x25a   :  { %660 = vmatmul.msk.bf16.vlgmr.msra.gmra.mxu1 %vm143_vm2, %v492_v25 }
 0x25b   :  { %v535_v26 = vpop.f32.mrf.mxu2 }
 0x25c   :  { %v536_v27 = vadd.f32 %v835_v54, %v535_v26 }
 0x25e   :  { %v540_v28 = vadd.f32 %v539_v11, %v536_v27 }
 0x260   :  { %v541_v29 = vsel %vm489_vm5, %v536_v27, %v540_v28 }
 0x261   :  { %vm542_vm6 = vcmp.gt.f32.partialorder %v541_v29, 0.5 }
 0x262   :  { %v664_v30 = vsel %vm542_vm6, 1.0, %v707_v10 }
 0x263   :  { %v545_v31 = vpack.c.bf16 %v664_v30, %v664_v30  ;;  %v537_v32 = vpop.f32.mrf.mxu2 }
 0x265   :  { %665 = vmatmul.msk.bf16.vlgmr.msra.gmra.mxu3 %vm143_vm2, %v545_v31 }
 0x2c4   :  { %v399_v33 = vpop.f32.mrf.mxu1 }
 0x2c5   :  { %v400_v35 = vadd.f32 %v864_v14, %v399_v33 }
 0x2c7   :  { %v404_v37 = vadd.f32 %v403_v36, %v400_v35 }
 0x2c9   :  { %v405_v38 = vsel %vm353_vm1, %v400_v35, %v404_v37 }
 0x2ca   :  { %vm406_vm7 = vcmp.gt.f32.partialorder %v405_v38, 0.5  ;;  %v456_v45 = vmul.f32 0.5, %v405_v38 }
 0x2cb   :  { %v651_v54 = vsel %vm406_vm7, 1.0, %v707_v10 }
 0x2cc   :  { %v409_v40 = vadd.f32 %v651_v54, %v356_v2  ;;  %v401_v41 = vpop.f32.mrf.mxu1 }
 0x2d7   :  { %v505_v42 = vpop.f32.mrf.mxu1 }
 0x2d8   :  { %v452_v43 = vpop.f32.mrf.mxu3  ;;  %v506_v47 = vadd.f32 %v864_v14, %v505_v42 }
 0x2d9   :  { %v453_v44 = vadd.f32 %v864_v14, %v452_v43 }
 0x2db   :  { %v457_v34 = vadd.f32 %v456_v45, %v453_v44 }
 0x2dd   :  { %v458_v46 = vsel %vm406_vm7, %v453_v44, %v457_v34 }
 0x2de   :  { %vm459_vm2 = vcmp.gt.f32.partialorder %v458_v46, 0.5  ;;  %v509_v5 = vmul.f32 0.5, %v458_v46 }
 0x2df   :  { %v656_v48 = vsel %vm459_vm2, 1.0, %v707_v10  ;;  %v507_v49 = vpop.f32.mrf.mxu1 }
 0x2e0   :  { %v462_v6 = vadd.f32 %v656_v48, %v409_v40  ;;  %v510_v50 = vadd.f32 %v509_v5, %v506_v47  ;;  %v454_v52 = vpop.f32.mrf.mxu3 }
 0x2e2   :  { %v511_v39 = vsel %vm459_vm2, %v506_v47, %v510_v50 }
 0x2e3   :  { %vm512_vm8 = vcmp.gt.f32.partialorder %v511_v39, 0.5  ;;  %v562_v57 = vmul.f32 0.5, %v511_v39 }
 0x2e4   :  { %v661_v53 = vsel %vm512_vm8, 1.0, %v707_v10 }
 0x2e5   :  { %v515_v55 = vadd.f32 %v661_v53, %v462_v6 }
 0x2e8   :  { %v558_v56 = vpop.f32.mrf.mxu3 }
 0x2e9   :  { %v559_v51 = vadd.f32 %v864_v14, %v558_v56 }
 0x2eb   :  { %v563_v58 = vadd.f32 %v562_v57, %v559_v51 }
 0x2ed   :  { %v564_v59 = vsel %vm512_vm8, %v559_v51, %v563_v58 }
 0x2ee   :  { %vm565_vm9 = vcmp.gt.f32.partialorder %v564_v59, 0.5 }
 0x2ef   :  { %v666_v60 = vsel %vm565_vm9, 1.0, %v707_v10 }
 0x2f0   :  { %v560_v61 = vpop.f32.mrf.mxu3  ;;  %v568_v62 = vadd.f32 %v666_v60, %v515_v55 }
 0x2f2   :  { %570 = vst.msk [vmem:[#allocation2] sm:$0xff] %vm569_vm10, %v568_v62 }
 0x2f3   :  { %581 = dma.vmem_to_hbm [thread:$0]  %s577_s19, 128, %s579_s22, [#allocation3]  }
 0x2f4   :  { %705 = dma.done.wait [#allocation3], 128  }
 0x2f5   :  { %706 = vsyncadd [#allocation3], 4294967168 }
 0x2f6   :  { %586 = vsyncpa [#allocation3], 1 }

</bundles_post_ra>
